<compile_context>
chip_gen: v7x
topology: tpu7x:2x2x1
jax: 0.10.0
libtpu: 0.0.40
codegen_flags: <defaults>
</compile_context>

<pallas_src>
import jax
import jax.numpy as jnp
from jax.experimental import pallas as pl
from jax.experimental.pallas import tpu as pltpu


_CHUNK_THRESHOLD_BYTES = 8 * 1024 * 1024   # below this: one whole-slab DMA
_MAX_DMA_CHUNKS = 4                        # parallel DMA streams for big slabs


def _make_dma_identity_kernel(chunks):
    """Build a kernel copying `chunks` (static (start, size) along axis 0)."""

    def kernel(x_hbm, o_hbm, sems):
        # Issue all DMAs first so multiple streams overlap, then wait on all.
        descs = []
        for c, (start, size) in enumerate(chunks):
            cp = pltpu.make_async_copy(
                x_hbm.at[pl.ds(start, size)],
                o_hbm.at[pl.ds(start, size)],
                sems.at[c],
            )
            cp.start()
            descs.append(cp)
        for cp in descs:
            cp.wait()

    return kernel


def _identity_copy(x: jax.Array) -> jax.Array:
    lead = x.shape[0]
    nbytes = x.size * jnp.dtype(x.dtype).itemsize

    # Split big slabs into a handful of leading-dim chunks (one DMA each);
    # small tensors are a single whole-array DMA.
    if nbytes >= _CHUNK_THRESHOLD_BYTES and lead >= 2:
        num_chunks = min(_MAX_DMA_CHUNKS, lead)
    else:
        num_chunks = 1
    chunk_rows = -(-lead // num_chunks)      # ceil-div, static Python ints
    chunks, start = [], 0
    while start < lead:
        size = min(chunk_rows, lead - start)
        chunks.append((start, size))
        start += size
    chunks = tuple(chunks)

    return pl.pallas_call(
        _make_dma_identity_kernel(chunks),
        out_shape=jax.ShapeDtypeStruct(x.shape, x.dtype),
        in_specs=[pl.BlockSpec(memory_space=pl.ANY)],
        out_specs=pl.BlockSpec(memory_space=pl.ANY),
        scratch_shapes=[pltpu.SemaphoreType.DMA((len(chunks),))],
        input_output_aliases={0: 0},
        compiler_params=pltpu.CompilerParams(has_side_effects=True),
        cost_estimate=pl.CostEstimate(
            flops=0,
            transcendentals=0,
            bytes_accessed=2 * nbytes,
        ),
    )(x)


@jax.jit
def dummy_hopfield_forward(x: jax.Array) -> jax.Array:
    """Pallas implementation of _DummyHopfield.forward (identity)."""
    if x.ndim == 0 or x.size == 0:
        return x
    return _identity_copy(x)


class DummyHopfield:
    """Mirror of the PyTorch fallback module: parameterless, forward(x) == x."""

    def __init__(self, *args, **kwargs):
        pass

    def __call__(self, x):
        return dummy_hopfield_forward(x)


if __name__ == "__main__":
    key = jax.random.PRNGKey(0)
    hopfield = DummyHopfield()

    # NCHW activation, as the module would see in the LSHN network.
    x = jax.random.normal(key, (2, 4, 16, 16), dtype=jnp.float32)
    y = jax.block_until_ready(hopfield(x))
    assert y.shape == x.shape, (y.shape, x.shape)
    assert y.dtype == x.dtype, (y.dtype, x.dtype)
    assert bool(jnp.array_equal(y, x)), "identity forward mismatch (NCHW)"

    # Awkward, non-128-divisible shape: exercises the fixed fallback
    # (DMA path has no lane-alignment requirement).
    x2 = jax.random.normal(jax.random.PRNGKey(1), (3, 5, 7), dtype=jnp.float32)
    y2 = jax.block_until_ready(hopfield(x2))
    assert y2.shape == x2.shape and y2.dtype == x2.dtype
    assert bool(jnp.array_equal(y2, x2)), "identity forward mismatch (ragged)"

    print("KERNEL_OK")
</pallas_src>

<mosaic_0001>
module attributes {stable_mosaic.version = 11 : i64} {
  func.func @kernel(%arg0: memref<2x4x16x16xf32, #tpu.memory_space<any>>, %arg1: memref<2x4x16x16xf32, #tpu.memory_space<any>>, %arg2: memref<1x!tpu.dma_semaphore, #tpu.memory_space<semaphore_mem>>) attributes {dimension_semantics = [], scalar_prefetch = 0 : i64, scratch_operands = 1 : i64, tpu.core_type = #tpu.core_type<tc>} {
    %c0_i32 = arith.constant 0 : i32
    %c0_i32_0 = arith.constant 0 : i32
    %c0_i32_1 = arith.constant 0 : i32
    %c0_i32_2 = arith.constant 0 : i32
    %c0_i32_3 = arith.constant 0 : i32
    %0 = tpu.memref_slice %arg0[%c0_i32_0, %c0_i32_1, %c0_i32_2, %c0_i32_3] : memref<2x4x16x16xf32, #tpu.memory_space<any>> -> memref<2x4x16x16xf32, #tpu.memory_space<any>>
    %c0_i32_4 = arith.constant 0 : i32
    %c0_i32_5 = arith.constant 0 : i32
    %c0_i32_6 = arith.constant 0 : i32
    %c0_i32_7 = arith.constant 0 : i32
    %1 = tpu.memref_slice %arg1[%c0_i32_4, %c0_i32_5, %c0_i32_6, %c0_i32_7] : memref<2x4x16x16xf32, #tpu.memory_space<any>> -> memref<2x4x16x16xf32, #tpu.memory_space<any>>
    %2 = tpu.memref_slice %arg2[%c0_i32] : memref<1x!tpu.dma_semaphore, #tpu.memory_space<semaphore_mem>> -> memref<1x!tpu.dma_semaphore, #tpu.memory_space<semaphore_mem>>
    %3 = tpu.memref_squeeze %2 : memref<1x!tpu.dma_semaphore, #tpu.memory_space<semaphore_mem>> -> memref<!tpu.dma_semaphore, #tpu.memory_space<semaphore_mem>>
    tpu.enqueue_dma source(%0 : memref<2x4x16x16xf32, #tpu.memory_space<any>>) target(%1 : memref<2x4x16x16xf32, #tpu.memory_space<any>>) target_semaphore(%3 : memref<!tpu.dma_semaphore, #tpu.memory_space<semaphore_mem>>)
    %c0_i32_8 = arith.constant 0 : i32
    %c0_i32_9 = arith.constant 0 : i32
    %c0_i32_10 = arith.constant 0 : i32
    %c0_i32_11 = arith.constant 0 : i32
    %c0_i32_12 = arith.constant 0 : i32
    %4 = tpu.memref_slice %arg0[%c0_i32_9, %c0_i32_10, %c0_i32_11, %c0_i32_12] : memref<2x4x16x16xf32, #tpu.memory_space<any>> -> memref<2x4x16x16xf32, #tpu.memory_space<any>>
    %c0_i32_13 = arith.constant 0 : i32
    %c0_i32_14 = arith.constant 0 : i32
    %c0_i32_15 = arith.constant 0 : i32
    %c0_i32_16 = arith.constant 0 : i32
    %5 = tpu.memref_slice %arg1[%c0_i32_13, %c0_i32_14, %c0_i32_15, %c0_i32_16] : memref<2x4x16x16xf32, #tpu.memory_space<any>> -> memref<2x4x16x16xf32, #tpu.memory_space<any>>
    %6 = tpu.memref_slice %arg2[%c0_i32_8] : memref<1x!tpu.dma_semaphore, #tpu.memory_space<semaphore_mem>> -> memref<1x!tpu.dma_semaphore, #tpu.memory_space<semaphore_mem>>
    %7 = tpu.memref_squeeze %6 : memref<1x!tpu.dma_semaphore, #tpu.memory_space<semaphore_mem>> -> memref<!tpu.dma_semaphore, #tpu.memory_space<semaphore_mem>>
    tpu.wait_dma2 semaphore(%7 : memref<!tpu.dma_semaphore, #tpu.memory_space<semaphore_mem>>) src(%4 : memref<2x4x16x16xf32, #tpu.memory_space<any>>) dst(%5 : memref<2x4x16x16xf32, #tpu.memory_space<any>>)
    return
  }
}

</mosaic_0001>

<bundles_post_ra>
// kernel: dummy_hopfield_forward.1
= control target key start
LH: loop header
LB: loop body
LE: loop exit
PB: predicated region body
PF: predicated region fallthrough
CT: control target
= control target key end

     0   :  { %s36_s6 = smov [#allocation2]   ;;  %s37_s7 = smov [#allocation3]   ;;  %s55_s0 = inlined_call_operand.hbm [shape: f32[2,4,16,16], index: 0, kind: input, shape index: {}, may-alias: {0,1}]   ;;  %s56_s1 = inlined_call_operand.hbm [shape: f32[2,4,16,16], index: 1, kind: output, shape index: {}, may-alias: {0,1}]  }
   0x1   :  { %s38_s8 = smov 0  }
   0x2   :  { %18 = dma.general %s55_s0, 2048, %s56_s1, %s36_s6, %s37_s7, [#allocation4], %s38_s8, 0  }
   0x3   :  { %34 = dma.done.wait [#allocation2], 2048 }
   0x4   :  { %35 = vsyncadd [#allocation2], 4294965248 }
   0x5   :  { %24 = vsyncmov [#allocation2] }
   0x8   :  { %s25_s13 = vpop.sfrf %24 }
   0x9   :  { %p30_p0 = scmp.ne.s32.totalorder %s25_s13, 0 }
   0xb   :  { %29 = shalt.err (%p30_p0)  }

</bundles_post_ra>
